<compile_context>
chip_gen: v7x
topology: tpu7x:2x2x1
jax: 0.10.0
libtpu: 0.0.40
codegen_flags: <defaults>
</compile_context>

<pallas_src>
import jax
import jax.numpy as jnp
from jax import lax
from jax.experimental import pallas as pl
from jax.experimental.pallas import tpu as pltpu


def _round_up(a, b):
    return -(-a // b) * b


def _make_kernel(cast_dtype, precision):
    def kernel(x_ref, w_ref, b_ref, o_ref):
        k = pl.program_id(2)

        @pl.when(k == 0)
        def _():
            o_ref[...] = jnp.zeros_like(o_ref)

        x = x_ref[...]
        w = w_ref[...]
        if cast_dtype is not None:          # trace-time branch
            x = x.astype(cast_dtype)
            w = w.astype(cast_dtype)
        # Accumulate directly into the resident fp32 output block.
        o_ref[...] += jnp.dot(
            x, w, preferred_element_type=jnp.float32, precision=precision)

        @pl.when(k == pl.num_programs(2) - 1)
        def _():
            # Bias added exactly once per output tile.
            o_ref[...] += b_ref[...]

    return kernel


def _pick_divisor_tile(dim, candidates):
    for c in candidates:
        if dim % c == 0:
            return c
    return dim


def _choose_m_tiling(M):
    """Return (tm, M_pad) preferring no zero-padding of the M axis."""
    # 1) largest multiple-of-8 divisor of M (<= 512): no padding, no x copy.
    for c in range(512, 7, -8):
        if M % c == 0:
            return c, M
    # 2) M not a multiple of 8 but small: a single full-extent block is legal.
    if M <= 512:
        return M, M
    # 3) large awkward M: allow modest (<= 12.5%) zero padding.
    for c in (512, 256, 128, 64, 32, 16, 8):
        Mp = _round_up(M, c)
        if (Mp - M) * 8 <= M:
            return c, Mp
    return 8, _round_up(M, 8)


def my_linear_att_forward(x, weight, bias):
    """y = x.astype(f32) @ weight.astype(f32).T + bias.astype(f32)

    x:      (..., in_features)           any float dtype
    weight: (out_features, in_features)  (PyTorch nn.Linear convention)
    bias:   (out_features,)
    returns (..., out_features) float32
    """
    *lead, K = x.shape
    N, Kw = weight.shape
    assert Kw == K, "weight in_features must match x last dim"
    M = 1
    for d in lead:
        M *= d
    x2d = x.reshape(M, K)

    # ---- dtype gating ------------------------------------------------------
    bf16_fast = (x.dtype == jnp.bfloat16) and (weight.dtype == jnp.bfloat16)
    if bf16_fast:
        # Single bf16 MXU pass with fp32 accumulation is bit-identical to
        # upcast-then-fp32-matmul for bf16-origin data.
        cast_dtype = None
        precision = None
    else:
        already_f32 = (x.dtype == jnp.float32) and (weight.dtype == jnp.float32)
        cast_dtype = None if already_f32 else jnp.float32  # e.g. fp16 inputs
        precision = lax.Precision.HIGHEST

    # ---- tiling / padding (zero K-pad is exact; N-pad gives lane-dense st) --
    K_pad = _round_up(K, 128)
    N_pad = _round_up(N, 128)
    tm, M_pad = _choose_m_tiling(M)
    tk = _pick_divisor_tile(K_pad, (512, 256, 128))
    tn = _pick_divisor_tile(N_pad, (512, 256, 128))

    grid_m = M_pad // tm
    grid_n = N_pad // tn
    # v7x megacore: make sure the two "parallel" axes expose >= 2 tiles.
    if grid_m * grid_n == 1:
        if tm % 16 == 0:
            tm //= 2
            grid_m = M_pad // tm
        elif tn >= 256:
            tn //= 2
            grid_n = N_pad // tn
    grid_k = K_pad // tk

    if (M_pad, K_pad) != (M, K):
        x2d = jnp.pad(x2d, ((0, M_pad - M), (0, K_pad - K)))

    # One-time (K, N) transpose of the weight: the kernel then contracts the
    # sublane axis of the RHS (no per-step XLU transpose inside the loop).
    w_kn = weight.T
    if (K_pad, N_pad) != (K, N):
        w_kn = jnp.pad(w_kn, ((0, K_pad - K), (0, N_pad - N)))

    b_in = bias.astype(jnp.float32)
    if N_pad != N:
        b_in = jnp.pad(b_in, (0, N_pad - N))
    b_in = b_in.reshape(1, N_pad)

    def _stream_spec(shape, index_map):
        # Deeper pipelining for the streamed operands when the reduction loop
        # is long enough to benefit.
        if grid_k >= 3:
            return pl.BlockSpec(shape, index_map, pipeline_mode=pl.Buffered(3))
        return pl.BlockSpec(shape, index_map)

    kernel = _make_kernel(cast_dtype, precision)

    out = pl.pallas_call(
        kernel,
        out_shape=jax.ShapeDtypeStruct((M_pad, N_pad), jnp.float32),
        grid=(grid_m, grid_n, grid_k),
        in_specs=[
            _stream_spec((tm, tk), lambda i, j, k: (i, k)),   # x tile
            _stream_spec((tk, tn), lambda i, j, k: (k, j)),   # weight tile (K, N)
            pl.BlockSpec((1, tn), lambda i, j, k: (0, j)),    # bias tile
        ],
        out_specs=pl.BlockSpec((tm, tn), lambda i, j, k: (i, j)),
        compiler_params=pltpu.CompilerParams(
            dimension_semantics=("parallel", "parallel", "arbitrary")),
    )(x2d, w_kn, b_in)

    out = out[:M, :N]
    return out.reshape(*lead, N)


if __name__ == "__main__":
    # --- test 1: fp32 inputs (matches the torch fp32 reference path) --------
    batch, seq, hidden, out_features = 2, 8, 32, 64
    key = jax.random.PRNGKey(0)
    kx, kw, kb = jax.random.split(key, 3)

    x = jax.random.normal(kx, (batch, seq, hidden), dtype=jnp.float32)
    weight = jax.random.normal(kw, (out_features, hidden), dtype=jnp.float32) * 0.05
    bias = jax.random.normal(kb, (out_features,), dtype=jnp.float32) * 0.01

    y = my_linear_att_forward(x, weight, bias)
    y = jax.block_until_ready(y)

    y_ref = (
        jnp.einsum("bsh,oh->bso", x, weight, precision=lax.Precision.HIGHEST)
        + bias
    )
    assert y.shape == (batch, seq, out_features)
    assert y.dtype == jnp.float32
    assert jnp.allclose(y, y_ref, atol=2e-5, rtol=2e-5)

    # --- test 2: bf16 fast path, awkward (non-128) N, multi-step K reduction -
    b2, s2, h2, o2 = 3, 56, 384, 200
    xb = jax.random.normal(kx, (b2, s2, h2), dtype=jnp.float32).astype(jnp.bfloat16)
    wb = (jax.random.normal(kw, (o2, h2), dtype=jnp.float32) * 0.05).astype(jnp.bfloat16)
    bb = (jax.random.normal(kb, (o2,), dtype=jnp.float32) * 0.01).astype(jnp.bfloat16)

    yb = jax.block_until_ready(my_linear_att_forward(xb, wb, bb))
    yb_ref = (
        jnp.einsum(
            "bsh,oh->bso",
            xb.astype(jnp.float32),
            wb.astype(jnp.float32),
            precision=lax.Precision.HIGHEST,
        )
        + bb.astype(jnp.float32)
    )
    assert yb.shape == (b2, s2, o2)
    assert yb.dtype == jnp.float32
    assert jnp.allclose(yb, yb_ref, atol=1e-4, rtol=1e-4)

    print("KERNEL_OK")
</pallas_src>

<mosaic_0001>
module attributes {stable_mosaic.version = 11 : i64} {
  func.func @kernel(%arg0: i32, %arg1: i32, %arg2: i32, %arg3: memref<8x128xf32, #tpu.memory_space<vmem>>, %arg4: memref<128x128xf32, #tpu.memory_space<vmem>>, %arg5: memref<1x128xf32, #tpu.memory_space<vmem>>, %arg6: memref<8x128xf32, #tpu.memory_space<vmem>>) attributes {dimension_semantics = [#tpu.dimension_semantics<parallel>, #tpu.dimension_semantics<parallel>, #tpu.dimension_semantics<arbitrary>], iteration_bounds = array<i64: 2, 1, 1>, scalar_prefetch = 0 : i64, scratch_operands = 0 : i64, tpu.core_type = #tpu.core_type<tc>, window_params = [{transform_indices = @transform_0, window_bounds = array<i64: 8, 128>}, {transform_indices = @transform_1, window_bounds = array<i64: 128, 128>}, {transform_indices = @transform_2, window_bounds = array<i64: 1, 128>}, {transform_indices = @transform_3, window_bounds = array<i64: 8, 128>}]} {
    %c0_i32 = arith.constant 0 : i32
    %0 = arith.cmpi eq, %arg2, %c0_i32 : i32
    %1 = arith.extui %0 : i1 to i32
    %c0_i32_0 = arith.constant 0 : i32
    %2 = arith.cmpi ne, %1, %c0_i32_0 : i32
    scf.if %2 {
      %cst_10 = arith.constant 0.000000e+00 : f32
      %12 = vector.broadcast %cst_10 : f32 to vector<8x128xf32>
      %c0_11 = arith.constant 0 : index
      %c0_12 = arith.constant 0 : index
      %13 = vector.load %arg6[%c0_11, %c0_12] : memref<8x128xf32, #tpu.memory_space<vmem>>, vector<8x128xf32>
      tpu.vector_store %arg6[%c0_11, %c0_12], %12 {strides = array<i32>} : memref<8x128xf32, #tpu.memory_space<vmem>>, vector<8x128xf32>,
    } else {
    }
    %c0 = arith.constant 0 : index
    %c0_1 = arith.constant 0 : index
    %3 = vector.load %arg3[%c0, %c0_1] : memref<8x128xf32, #tpu.memory_space<vmem>>, vector<8x128xf32>
    %c0_2 = arith.constant 0 : index
    %c0_3 = arith.constant 0 : index
    %4 = vector.load %arg4[%c0_2, %c0_3] : memref<128x128xf32, #tpu.memory_space<vmem>>, vector<128x128xf32>
    %c0_4 = arith.constant 0 : index
    %c0_5 = arith.constant 0 : index
    %5 = vector.load %arg6[%c0_4, %c0_5] : memref<8x128xf32, #tpu.memory_space<vmem>>, vector<8x128xf32>
    %cst = arith.constant dense<0.000000e+00> : vector<8x128xf32>
    %6 = tpu.matmul %3, %4, %cst {dimension_numbers = #tpu.dot_dimension_numbers<[1], [0], [0], [1], [0, 0, 1, 1], [], []>, precision = #tpu.contract_precision<fp32>} : vector<8x128xf32>, vector<128x128xf32>, vector<8x128xf32> -> vector<8x128xf32>
    %7 = arith.addf %5, %6 : vector<8x128xf32>
    %c0_6 = arith.constant 0 : index
    %c0_7 = arith.constant 0 : index
    %8 = vector.load %arg6[%c0_6, %c0_7] : memref<8x128xf32, #tpu.memory_space<vmem>>, vector<8x128xf32>
    tpu.vector_store %arg6[%c0_6, %c0_7], %7 {strides = array<i32>} : memref<8x128xf32, #tpu.memory_space<vmem>>, vector<8x128xf32>,
    %c0_i32_8 = arith.constant 0 : i32
    %9 = arith.cmpi eq, %arg2, %c0_i32_8 : i32
    %10 = arith.extui %9 : i1 to i32
    %c0_i32_9 = arith.constant 0 : i32
    %11 = arith.cmpi ne, %10, %c0_i32_9 : i32
    scf.if %11 {
      %c0_10 = arith.constant 0 : index
      %c0_11 = arith.constant 0 : index
      %12 = vector.load %arg6[%c0_10, %c0_11] : memref<8x128xf32, #tpu.memory_space<vmem>>, vector<8x128xf32>
      %c0_12 = arith.constant 0 : index
      %c0_13 = arith.constant 0 : index
      %13 = vector.load %arg5[%c0_12, %c0_13] : memref<1x128xf32, #tpu.memory_space<vmem>>, vector<1x128xf32>
      %14 = vector.broadcast %13 : vector<1x128xf32> to vector<8x128xf32>
      %15 = arith.addf %12, %14 : vector<8x128xf32>
      %c0_14 = arith.constant 0 : index
      %c0_15 = arith.constant 0 : index
      %16 = vector.load %arg6[%c0_14, %c0_15] : memref<8x128xf32, #tpu.memory_space<vmem>>, vector<8x128xf32>
      tpu.vector_store %arg6[%c0_14, %c0_15], %15 {strides = array<i32>} : memref<8x128xf32, #tpu.memory_space<vmem>>, vector<8x128xf32>,
    } else {
    }
    return
  }
  func.func @transform_0(%arg0: i32, %arg1: i32, %arg2: i32) -> (i32, i32) {
    %c0_i32 = arith.constant 0 : i32
    return %arg0, %arg2 : i32, i32
  }
  func.func @transform_1(%arg0: i32, %arg1: i32, %arg2: i32) -> (i32, i32) {
    %c0_i32 = arith.constant 0 : i32
    return %arg2, %arg1 : i32, i32
  }
  func.func @transform_2(%arg0: i32, %arg1: i32, %arg2: i32) -> (i32, i32) {
    %c0_i32 = arith.constant 0 : i32
    %c0_i32_0 = arith.constant 0 : i32
    return %c0_i32, %arg1 : i32, i32
  }
  func.func @transform_3(%arg0: i32, %arg1: i32, %arg2: i32) -> (i32, i32) {
    %c0_i32 = arith.constant 0 : i32
    return %arg0, %arg1 : i32, i32
  }
}

</mosaic_0001>

<bundles_post_ra>
// kernel: tpu_custom_call.1
= control target key start
LH: loop header
LB: loop body
LE: loop exit
PB: predicated region body
PF: predicated region fallthrough
CT: control target
= control target key end

     0   :  { %8 = vsyncpa [#allocation3], 0  ;;  %s2262_s0 = inlined_call_operand.hbm [shape: f32[16,128], index: 0, kind: input, shape index: {}]   ;;  %s2263_s1 = inlined_call_operand.hbm [shape: f32[128,128], index: 1, kind: input, shape index: {}]   ;;  %s2264_s2 = inlined_call_operand.vmem [shape: f32[1,128], index: 2, kind: input, shape index: {}]   ;;  %s2265_s3 = inlined_call_operand.hbm [shape: f32[16,128], index: 3, kind: output, shape index: {}]  }
   0x1   :  { %10 = vsyncpa [#allocation3 + $0x1], 0 }
   0x2   :  { %11 = vsyncpa [#allocation6], 0 }
   0x3   :  { %12 = vsyncpa [#allocation4], 0 }
   0x4   :  { %14 = vsyncpa [#allocation4 + $0x1], 0  ;;  %s1779_s12 = smov 0   ;;  %s1781_s13 = smov 0  }
   0x5   :  { %s1783_s14 = smov 0   ;;  %s1785_s15 = smov 0  }
   0x6   :  { %s1787_s16 = smov 0   ;;  %s1789_s17 = smov 0  }
   0x7 LB: > { %s1054_s18 = sadd.s32 4294967295, %s1749_s17   ;;  %s1055_s19 = sadd.s32 4294967294, %s1749_s17   ;;  %s1749_s17 = sphi %s1789_s17, %s20_s17   ;;  %s1745_s16 = sphi %s1787_s16, %s2289_s16   ;;  %s1741_s15 = sphi %s1785_s15, %s2288_s15   ;;  %s1737_s14 = sphi %s1783_s14, %s2287_s14   ;;  %s1733_s13 = sphi %s1781_s13, %s2286_s13   ;;  %s1729_s12 = sphi %s1779_s12, %s2285_s12  }
   0x8   : > { %p61_p0 = scmp.ne.s32.totalorder %s1733_s13, %s1729_s12  ;;  %p1813_p1 = scmp.eq.s32.totalorder %s1054_s18, 0 }
   0x9   : > { %p1817_p2 = scmp.eq.s32.totalorder %s1054_s18, 1  ;;  %p147_p3 = scmp.eq.s32.totalorder %s1055_s19, 1 }
   0xa   : > { %s2270_s20 = scalar_select %p1813_p1, 1, 0 }
   0xb   : > { %s2271_s21 = scalar_select %p1817_p2, 1, 0 }
   0xc   : > { %p1823_p4 = por %p1813_p1, %p61_p0  ;;  %p1056_p5 = scmp.ge.s32.totalorder %s1749_s17, 1 }
   0xd   : > { %p1828_p6 = por %p147_p3, %p61_p0  ;;  %p154_p7 = scmp.lt.s32.totalorder %s1749_s17, 3 }
   0xe   : > { %s2272_s22 = scalar_select %p1823_p4, 1, 0 }
   0xf   : > { %s2273_s23 = scalar_select %p1828_p6, 1, 0 }
  0x10   : > { %p1833_p8 = pnand %p1056_p5, %p154_p7  ;;  %s1751_s25 = smov [#allocation5]  }
  0x11   : > { %s170_s26 = sshll.u32 %s1751_s25, 4  ;;  %s39_s28 = sadd.s32 1, %s1745_s16  ;;  %s171_s26 = int_to_ptr.vmem [resolvable:$true] %s170_s26 }
  0x12   : > { %s2274_s24 = scalar_select %p1833_p8, 1, 0 }
  0x13   : > { %p1535_p9 = pneg %p1833_p8  ;;  %s1605_s4 = scalar_lea.hbm %s2263_s1, 2048 }
  0x14   : > { %p1606_p12 = scmp.ne.s32.totalorder %s2263_s1, %s1605_s4  ;;  %p1612_p5 = scmp.lt.u32.totalorder %s1605_s4, %s2263_s1 }
  0x15   : > { %p1842_p11 = pnand %p1535_p9, %p1813_p1 }
  0x17   : > { %p1607_p13 = pneg %p1842_p11 }
  0x19   : > { %p1608_p0 = pnand %p1607_p13, %p1606_p12 }
  0x1b   : > { %p1609_p3 = pneg %p1608_p0 }
  0x1d   : > { %p1614_p7 = pnand %p1612_p5, %p1609_p3 }
  0x1f   : > { %1617 = shalt.err (!%p1614_p7)
}
  0x20   : > { %s1618_s9 = scalar_lea.vmem %s171_s26, 2048  ;;  %p1626_p1 = scmp.lt.s32.totalorder %s171_s26, %s171_s26 }
  0x21   : > { %p1619_p9 = scmp.ne.s32.totalorder %s171_s26, %s1618_s9  ;;  %p1627_p4 = scmp.lt.s32.totalorder %s1618_s9, %s1618_s9 }
  0x23   : > { %p1621_p10 = pnand %p1619_p9, %p1607_p13  ;;  %p1628_p8 = por %p1627_p4, %p1626_p1 }
  0x25   : > { %p1622_p6 = pneg %p1621_p10 }
  0x27   : > { %p1629_p2 = pnand %p1628_p8, %p1622_p6 }
  0x29   : > { %1632 = shalt.err (!%p1629_p2)
}
  0x2a   : > { %s1752_s10 = smov 128   ;;  %s1753_s11 = smov 8  }
  0x2b   : > { %1538 = dma.hbm_to_vmem [thread:$0]  (!%p1842_p11), %s2263_s1, 2048, %s171_s26, [#allocation6], %s1752_s10, %s1752_s10, %s1753_s11  }
  0x2c   : > { %p41_p1 = scmp.ge.s32.totalorder %s39_s28, 2  ;;  %s48_s25 = sadd.s32 1, %s1737_s14 }
  0x2d   : > { %p55_p2 = scmp.ne.s32.totalorder %s1737_s14, %s1733_s13  ;;  %p56_p4 = scmp.eq.s32.totalorder %s1749_s17, 0 }
  0x2e   : > { %s2291_s28 = smov (%p41_p1, %s39_s28), 0  ;;  %p2277_p8 = scmp.ne.s32.totalorder %s2271_s21, 0 }
  0x2f   : > { %p1869_p6 = por %p56_p4, %p55_p2  ;;  %s43_s27 = ssub.s32 %s1745_s16, %s2291_s28 }
  0x30   : > { %p1875_p10 = por %p2277_p8, %p55_p2  ;;  %p1548_p12 = scmp.lt.s32.totalorder %s1749_s17, 2 }
  0x31   : > { %p46_p11 = scmp.eq.s32.totalorder %s43_s27, 0  ;;  %s190_s26 = sand.u32 1, %s1737_s14  }
  0x32   : > { %s1060_s4 = sshll.u32 %s190_s26, 3  ;;  %s1061_s6 = sshll.u32 %s1745_s16, 7 }
  0x33   : > { %s1884_s5 = scalar_select %p46_p11, %s1737_s14, %s48_s25  }
  0x34   : > { %s1890_s9 = scalar_lea.hbm %s2262_s0, %s1061_s6  ;;  %s194_s21 = scalar_lea.vmem [#allocation2], %s1060_s4 }
  0x35   : > { %s202_s10 = sshll.u32 %s194_s21, 4  ;;  %p1896_p13 = pnand %p1548_p12, %p1869_p6  ;;  %s1892_s10 = int_to_ptr.vmem [resolvable:$true] %s202_s10 }
  0x36   : > { %s191_s18 = scalar_lea.sflag [#allocation3], %s190_s26  ;;  %s1633_s19 = scalar_lea.hbm %s1890_s9, 128 }
  0x37   : > { %p1634_p0 = scmp.ne.s32.totalorder %s1890_s9, %s1633_s19  ;;  %p1635_p3 = pneg %p1896_p13 }
  0x38   : > { %s1638_s4 = scalar_lea.hbm %s2262_s0, 256  ;;  %p1639_p9 = scmp.lt.u32.totalorder %s1890_s9, %s2262_s0 }
  0x39   : > { %p1636_p5 = pnand %p1635_p3, %p1634_p0  ;;  %p1640_p1 = scmp.lt.u32.totalorder %s1638_s4, %s1633_s19 }
  0x3a   : > { %p1642_p4 = scmp.lt.u32.totalorder %s1633_s19, %s1890_s9 }
  0x3b   : > { %p1637_p7 = pneg %p1636_p5  ;;  %p1641_p2 = por %p1640_p1, %p1639_p9 }
  0x3d   : > { %p1643_p6 = por %p1642_p4, %p1641_p2 }
  0x3f   : > { %p1644_p8 = pnand %p1643_p6, %p1637_p7 }
  0x41   : > { %1647 = shalt.err (!%p1644_p8)
}
  0x42   : > { %s1648_s26 = scalar_lea.vmem %s1892_s10, 128  ;;  %s1754_s7 = smov [#allocation2]  }
  0x43   : > { %p1649_p12 = scmp.ne.s32.totalorder %s1892_s10, %s1648_s26  ;;  %s1653_s8 = sshll.u32 %s1754_s7, 4  ;;  %s1654_s8 = int_to_ptr.vmem [resolvable:$false] %s1653_s8 }
  0x44   : > { %s1655_s21 = scalar_lea.vmem %s1654_s8, 256  ;;  %p1656_p5 = scmp.lt.s32.totalorder %s1892_s10, %s1654_s8 }
  0x45   : > { %p1651_p11 = pnand %p1649_p12, %p1635_p3  ;;  %p1657_p9 = scmp.lt.s32.totalorder %s1655_s21, %s1648_s26 }
  0x47   : > { %p1652_p0 = pneg %p1651_p11  ;;  %p1658_p1 = por %p1657_p9, %p1656_p5 }
  0x49   : > { %p1659_p2 = pnand %p1658_p1, %p1652_p0 }
  0x4b   : > { %1662 = shalt.err (!%p1659_p2)
}
  0x4c   : > { %1542 = dma.hbm_to_vmem [thread:$0]  (!%p1896_p13), %s1890_s9, 128, %s1892_s10, %s191_s18  }
  0x4d   : > { %p2280_p7 = scmp.ne.s32.totalorder %s2274_s24, 0 }
  0x4e   : > { %s1928_s19 = sand.u32 (!%p2280_p7), 1, %s1733_s13   ;;  %p2281_p3 = scmp.ne.s32.totalorder (!%p2280_p7), %s2272_s22, 0 }
  0x4f   : > { %211 = sbr.rel (%p2280_p7) target bundleno = 429 (0x1ad), region = 32  ;;  %s1063_s25 = sshll.u32 (!%p2280_p7), %s1928_s19, 3 }
  0x50   : > { %s214_s27 = scalar_lea.sflag (!%p2280_p7), [#allocation3], %s1928_s19  ;;  %s1934_s4 = scalar_lea.vmem (!%p2280_p7), [#allocation2], %s1063_s25 }
  0x56   : > { %1716 = dma.done.wait (%p2281_p3), %s214_s27, 128  }
  0x57   : > { %1718 = vsyncadd (%p2281_p3), %s214_s27, 4294967168  ;;  %p2282_p13 = scmp.ne.s32.totalorder %s2270_s20, 0 }
  0x59   : > { %1720 = dma.done.wait (%p2282_p13), [#allocation6], 2048  }
  0x5a   : > { %1722 = vsyncadd (%p2282_p13), [#allocation6], 4294965248  ;;  %v1755_v0 = vmov 0.0|0.0   ;;  %vm1756_vm0 = vmmov 0   ;;  %v1757_v1 = vmov 0.0   ;;  %v257_v2 = vld [vmem:[#allocation5] sm:$0xff] }
  0x5b   : > { %1383 = vmatprep.subr.bf16.mxu0 %v1755_v0  ;;  %1407 = vmatprep.subr.bf16.mxu1 %v1755_v0  ;;  %v258_v3 = vld [vmem:[#allocation5 + $0x8] sm:$0xff]  ;;  %v259_v4 = vld [vmem:[#allocation5 + $0x10] sm:$0xff]  ;;  %v275_v5 = vand.u32 4294901760, %v257_v2  ;;  %v260_v7 = vld [vmem:[#allocation5 + $0x18] sm:$0xff]  ;;  %s1068_s24 = sshll.u32 %s1741_s15, 7  ;;  %s246_s9 = scalar_lea.vmem [#allocation7], %s1063_s25 }
  0x5c   : > { %1205 = vmatprep.mubr.msk.f32.mxu0 %vm1756_vm0, %v1757_v1  ;;  %1240 = vmatprep.mubr.msk.f32.mxu1 %vm1756_vm0, %v1757_v1  ;;  %v278_v6 = vand.u32 4294901760, %v258_v3  ;;  %v281_v8 = vand.u32 4294901760, %v259_v4  ;;  %v261_v9 = vld [vmem:[#allocation5 + $0x20] sm:$0xff]  ;;  %v262_v10 = vld [vmem:[#allocation5 + $0x28] sm:$0xff]  ;;  %v284_v11 = vand.u32 4294901760, %v260_v7  ;;  %v263_v14 = vld [vmem:[#allocation5 + $0x30] sm:$0xff]  ;;  %s2213_s29 = scalar_lea.hbm %s2265_s3, %s1068_s24 }
  0x5d   : > { %v287_v12 = vand.u32 4294901760, %v261_v9  ;;  %v290_v13 = vand.u32 4294901760, %v262_v10  ;;  %v1952_v16 = vsub.f32 %v257_v2, %v275_v5  ;;  %v264_v19 = vld [vmem:[#allocation5 + $0x38] sm:$0xff]  ;;  %v265_v20 = vld [vmem:[#allocation5 + $0x40] sm:$0xff]  ;;  %v293_v26 = vand.u32 4294901760, %v263_v14  ;;  %v266_v27 = vld [vmem:[#allocation5 + $0x48] sm:$0xff] }
  0x5e   : > { %v1950_v15 = vpack.c.bf16 %v278_v6, %v275_v5  ;;  %v1954_v17 = vsub.f32 %v258_v3, %v278_v6  ;;  %v1956_v18 = vsub.f32 %v259_v4, %v281_v8  ;;  %v1958_v21 = vpack.c.bf16 %v284_v11, %v281_v8  ;;  %v267_v40 = vld [vmem:[#allocation5 + $0x50] sm:$0xff]  ;;  %v268_v41 = vld [vmem:[#allocation5 + $0x58] sm:$0xff]  ;;  %v269_v50 = vld [vmem:[#allocation5 + $0x60] sm:$0xff]  ;;  %s945_s10 = sshll.u32 %s246_s9, 4  ;;  %s931_s6 = scalar_lea.sflag [#allocation4], %s1928_s19  ;;  %s2215_s10 = int_to_ptr.vmem [resolvable:$true] %s945_s10 }
  0x5f   : > { %v1960_v22 = vsub.f32 %v260_v7, %v284_v11  ;;  %v1963_v23 = vsub.f32 %v261_v9, %v287_v12  ;;  %v368_v24 = vand.u32 4294901760, %v1952_v16  ;;  %v296_v28 = vand.u32 4294901760, %v264_v19  ;;  %v270_v59 = vld [vmem:[#allocation5 + $0x68] sm:$0xff]  ;;  %v271_v2 = vld [vmem:[#allocation5 + $0x70] sm:$0xff]  ;;  %v272_v7 = vld [vmem:[#allocation5 + $0x78] sm:$0xff]  ;;  %s1663_s26 = scalar_lea.vmem %s2215_s10, 128 }
  0x60   : > { %1385 = vmatpush3.bf16.msra.mxu0 %v1950_v15  ;;  %v375_v25 = vand.u32 4294901760, %v1954_v17  ;;  %v382_v29 = vand.u32 4294901760, %v1956_v18  ;;  %v299_v31 = vand.u32 4294901760, %v265_v20  ;;  %v1970_v32 = vsub.f32 %v262_v10, %v290_v13  ;;  %p1664_p4 = scmp.ne.s32.totalorder %s2215_s10, %s1663_s26  ;;  %s1758_s15 = smov [#allocation7]  }
  0x61   : > { %1386 = vmatprep.subr.bf16.mxu0 %v1755_v0  ;;  %v389_v30 = vand.u32 4294901760, %v1960_v22  ;;  %v369_v33 = vsub.f32 %v1952_v16, %v368_v24  ;;  %v1978_v35 = vsub.f32 %v263_v14, %v293_v26  ;;  %v1980_v36 = vsub.f32 %v264_v19, %v296_v28  ;;  %s1667_s7 = sshll.u32 %s1758_s15, 4  ;;  %s1668_s7 = int_to_ptr.vmem [resolvable:$false] %s1667_s7 }
  0x62   : > { %v376_v34 = vsub.f32 %v1954_v17, %v375_v25  ;;  %v383_v37 = vsub.f32 %v1956_v18, %v382_v29  ;;  %v302_v39 = vand.u32 4294901760, %v266_v27  ;;  %v1989_v42 = vpack.c.bf16 %v290_v13, %v287_v12  ;;  %p1665_p6 = pnand %p1664_p4, %p1875_p10  ;;  %s1669_s8 = scalar_lea.vmem %s1668_s7, 256 }
  0x63   : > { %v390_v38 = vsub.f32 %v1960_v22, %v389_v30  ;;  %v370_v43 = vand.u32 4294901760, %v369_v33  ;;  %v1991_v45 = vpack.c.bf16 %v296_v28, %v293_v26  ;;  %v1994_v48 = vsub.f32 %v265_v20, %v299_v31  ;;  %p1670_p12 = scmp.lt.s32.totalorder %s2215_s10, %s1668_s7  ;;  %p1671_p11 = scmp.lt.s32.totalorder %s1669_s8, %s1663_s26 }
  0x64   : > { %1388 = vmatpush3.bf16.msra.mxu0 %v1958_v21  ;;  %v377_v44 = vand.u32 4294901760, %v376_v34  ;;  %v384_v46 = vand.u32 4294901760, %v383_v37  ;;  %v396_v49 = vand.u32 4294901760, %v1963_v23  ;;  %v403_v52 = vand.u32 4294901760, %v1970_v32  ;;  %p1666_p8 = pneg %p1665_p6 }
  0x65   : > { %1389 = vmatprep.subr.bf16.mxu0 %v1755_v0  ;;  %v391_v47 = vand.u32 4294901760, %v390_v38  ;;  %v305_v53 = vand.u32 4294901760, %v267_v40  ;;  %v308_v54 = vand.u32 4294901760, %v268_v41  ;;  %v1998_v55 = vsub.f32 %v266_v27, %v302_v39  ;;  %p1672_p0 = por %p1671_p11, %p1670_p12 }
  0x66   : > { %v1408_v51 = vpack.c.bf16 %v377_v44, %v370_v43  ;;  %v397_v56 = vsub.f32 %v1963_v23, %v396_v49  ;;  %v410_v57 = vand.u32 4294901760, %v1978_v35  ;;  %v417_v58 = vand.u32 4294901760, %v1980_v36 }
  0x67   : > { %v1411_v60 = vpack.c.bf16 %v391_v47, %v384_v46  ;;  %v2006_v61 = vpack.c.bf16 %v302_v39, %v299_v31  ;;  %v404_v62 = vsub.f32 %v1970_v32, %v403_v52  ;;  %v311_v63 = vand.u32 4294901760, %v269_v50  ;;  %v256_v31 = vld [vmem:[%s1934_s4] sm:$0xff]  ;;  %p1673_p5 = pnand %p1672_p0, %p1666_p8 }
  0x68   : > { %1391 = vmatpush3.bf16.msra.mxu0 %v1989_v42  ;;  %1409 = vmatpush3.bf16.msra.mxu1 %v1408_v51  ;;  %v398_v3 = vand.u32 4294901760, %v397_v56  ;;  %v2013_v4 = vsub.f32 %v267_v40, %v305_v53  ;;  %v411_v5 = vsub.f32 %v1978_v35, %v410_v57  ;;  %v418_v6 = vsub.f32 %v1980_v36, %v417_v58 }
  0x69   : > { %1392 = vmatprep.subr.bf16.mxu0 %v1755_v0  ;;  %1410 = vmatprep.subr.bf16.mxu1 %v1755_v0  ;;  %v405_v8 = vand.u32 4294901760, %v404_v62  ;;  %v2021_v9 = vsub.f32 %v268_v41, %v308_v54  ;;  %v314_v10 = vand.u32 4294901760, %v270_v59  ;;  %v424_v11 = vand.u32 4294901760, %v1994_v48 }
  0x6a   : > { %v412_v12 = vand.u32 4294901760, %v411_v5  ;;  %v419_v13 = vand.u32 4294901760, %v418_v6  ;;  %v431_v14 = vand.u32 4294901760, %v1998_v55  ;;  %v317_v19 = vand.u32 4294901760, %v271_v2 }
  0x6b   : > { %v1414_v20 = vpack.c.bf16 %v405_v8, %v398_v3  ;;  %v2026_v26 = vsub.f32 %v269_v50, %v311_v63  ;;  %v2028_v27 = vsub.f32 %v270_v59, %v314_v10  ;;  %v320_v28 = vand.u32 4294901760, %v272_v7 }
  0x6c   : > { %1394 = vmatpush3.bf16.msra.mxu0 %v1991_v45  ;;  %1412 = vmatpush3.bf16.msra.mxu1 %v1411_v60  ;;  %v425_v33 = vsub.f32 %v1994_v48, %v424_v11  ;;  %v432_v34 = vsub.f32 %v1998_v55, %v431_v14  ;;  %v438_v37 = vand.u32 4294901760, %v2013_v4  ;;  %v2040_v38 = vpack.c.bf16 %v308_v54, %v305_v53 }
  0x6d   : > { %1395 = vmatprep.subr.bf16.mxu0 %v1755_v0  ;;  %1413 = vmatprep.subr.bf16.mxu1 %v1755_v0  ;;  %v1417_v39 = vpack.c.bf16 %v419_v13, %v412_v12  ;;  %v2042_v40 = vsub.f32 %v271_v2, %v317_v19  ;;  %v445_v41 = vand.u32 4294901760, %v2021_v9  ;;  %v2048_v47 = vand.u32 4294901760, %v256_v31 }
  0x6e   : > { %v426_v43 = vand.u32 4294901760, %v425_v33  ;;  %v433_v44 = vand.u32 4294901760, %v432_v34  ;;  %v439_v46 = vsub.f32 %v2013_v4, %v438_v37  ;;  %v2051_v50 = vsub.f32 %v272_v7, %v320_v28 }
  0x6f   : > { %v446_v51 = vsub.f32 %v2021_v9, %v445_v41  ;;  %v452_v53 = vand.u32 4294901760, %v2026_v26  ;;  %v459_v54 = vand.u32 4294901760, %v2028_v27  ;;  %v2061_v56 = vsub.f32 %v256_v31, %v2048_v47 }
  0x70   : > { %1397 = vmatpush3.bf16.msra.mxu0 %v2006_v61  ;;  %1415 = vmatpush3.bf16.msra.mxu1 %v1414_v20  ;;  %v2063_v59 = vpack.c.bf16 %v314_v10, %v311_v63  ;;  %v1420_v60 = vpack.c.bf16 %v433_v44, %v426_v43  ;;  %v440_v62 = vand.u32 4294901760, %v439_v46  ;;  %v466_v3 = vand.u32 4294901760, %v2042_v40 }
  0x71   : > { %1398 = vmatprep.subr.bf16.mxu0 %v1755_v0  ;;  %1416 = vmatprep.subr.bf16.mxu1 %v1755_v0  ;;  %v357_v2 = vand.u32 4294901760, %v2061_v56  ;;  %v447_v5 = vand.u32 4294901760, %v446_v51  ;;  %v453_v6 = vsub.f32 %v2026_v26, %v452_v53  ;;  %v460_v7 = vsub.f32 %v2028_v27, %v459_v54 }
  0x72   : > { %v473_v63 = vand.u32 4294901760, %v2051_v50  ;;  %v2077_v8 = vpack.c.bf16 %v320_v28, %v317_v19  ;;  %v467_v12 = vsub.f32 %v2042_v40, %v466_v3  ;;  %v1432_v34 = vpack.c.bf16 %v1954_v17, %v1952_v16 }
  0x73   : > { %v358_v10 = vsub.f32 %v2061_v56, %v357_v2  ;;  %v1423_v13 = vpack.c.bf16 %v447_v5, %v440_v62  ;;  %v454_v20 = vand.u32 4294901760, %v453_v6  ;;  %v461_v31 = vand.u32 4294901760, %v460_v7 }
  0x74   : > { %1400 = vmatpush3.bf16.msra.mxu0 %v2040_v38  ;;  %1418 = vmatpush3.bf16.msra.mxu1 %v1417_v39  ;;  %v474_v33 = vsub.f32 %v2051_v50, %v473_v63  ;;  %v468_v39 = vand.u32 4294901760, %v467_v12  ;;  %v1435_v46 = vpack.c.bf16 %v1960_v22, %v1956_v18  ;;  %v1438_v51 = vpack.c.bf16 %v1970_v32, %v1963_v23 }
  0x75   : > { %1401 = vmatprep.subr.bf16.mxu0 %v1755_v0  ;;  %1419 = vmatprep.subr.bf16.mxu1 %v1755_v0  ;;  %v359_v19 = vand.u32 4294901760, %v358_v10  ;;  %v1426_v28 = vpack.c.bf16 %v461_v31, %v454_v20  ;;  %v1444_v62 = vpack.c.bf16 %v1998_v55, %v1994_v48  ;;  %v1447_v5 = vpack.c.bf16 %v2021_v9, %v2013_v4 }
  0x76   : > { %v475_v43 = vand.u32 4294901760, %v474_v33  ;;  %v1450_v6 = vpack.c.bf16 %v2028_v27, %v2026_v26  ;;  %v1453_v7 = vpack.c.bf16 %v2051_v50, %v2042_v40  ;;  %v1480_v10 = vpack.c.bf16 %v375_v25, %v368_v24 }
  0x77   : > { %v1483_v12 = vpack.c.bf16 %v389_v30, %v382_v29  ;;  %v1486_v16 = vpack.c.bf16 %v403_v52, %v396_v49  ;;  %v1489_v17 = vpack.c.bf16 %v417_v58, %v410_v57  ;;  %v1498_v18 = vpack.c.bf16 %v459_v54, %v452_v53  ;;  %v1066_v58 = vld [vmem:[%s2264_s2] ss:$0 sm:$0xff] }
  0x78   : > { %1403 = vmatpush3.bf16.msra.mxu0 %v2063_v59  ;;  %1421 = vmatpush3.bf16.msra.mxu1 %v1420_v60  ;;  %v1429_v44 = vpack.c.bf16 %v475_v43, %v468_v39  ;;  %v1441_v60 = vpack.c.bf16 %v1980_v36, %v1978_v35 }
  0x79   : > { %1404 = vmatprep.subr.bf16.mxu0 %v1755_v0  ;;  %1422 = vmatprep.subr.bf16.mxu1 %v1755_v0 }
  0x7c   : > { %1406 = vmatpush3.bf16.msra.mxu0 %v2077_v8  ;;  %1424 = vmatpush3.bf16.msra.mxu1 %v1423_v13 }
  0x7d   : > { %1425 = vmatprep.subr.bf16.mxu1 %v1755_v0  ;;  %1431 = vmatprep.subr.bf16.mxu0 %v1755_v0 }
  0x7f   : > { %1206 = vmatmul.mubr.f32.vlgmr.msra.gmra.mrb[0].mxu0 %v359_v19 }
  0x80   : > { %1427 = vmatpush3.bf16.msra.mxu1 %v1426_v28  ;;  %1433 = vmatpush3.bf16.msra.mxu0 %v1432_v34 }
  0x81   : > { %1428 = vmatprep.subr.bf16.mxu1 %v1755_v0  ;;  %1434 = vmatprep.subr.bf16.mxu0 %v1755_v0 }
  0x82   : > { %1275 = vmatprep.mubr.msk.f32.mxu0 %vm1756_vm0, %v1757_v1 }
  0x84   : > { %1430 = vmatpush3.bf16.msra.mxu1 %v1429_v44  ;;  %1436 = vmatpush3.bf16.msra.mxu0 %v1435_v46 }
  0x85   : > { %1437 = vmatprep.subr.bf16.mxu0 %v1755_v0  ;;  %1455 = vmatprep.subr.bf16.mxu1 %v1755_v0 }
  0x87   : > { %1241 = vmatmul.mubr.f32.vlgmr.msra.gmra.mrb[0].mxu1 %v2048_v47 }
  0x88   : > { %1439 = vmatpush3.bf16.msra.mxu0 %v1438_v51  ;;  %1457 = vmatpush3.bf16.msra.mxu1 %v1950_v15 }
  0x89   : > { %1440 = vmatprep.subr.bf16.mxu0 %v1755_v0  ;;  %1458 = vmatprep.subr.bf16.mxu1 %v1755_v0 }
  0x8a   : > { %1310 = vmatprep.mubr.msk.f32.mxu1 %vm1756_vm0, %v1757_v1 }
  0x8c   : > { %1442 = vmatpush3.bf16.msra.mxu0 %v1441_v60  ;;  %1460 = vmatpush3.bf16.msra.mxu1 %v1958_v21 }
  0x8d   : > { %1443 = vmatprep.subr.bf16.mxu0 %v1755_v0  ;;  %1461 = vmatprep.subr.bf16.mxu1 %v1755_v0 }
  0x90   : > { %1445 = vmatpush3.bf16.msra.mxu0 %v1444_v62  ;;  %1463 = vmatpush3.bf16.msra.mxu1 %v1989_v42 }
  0x91   : > { %1446 = vmatprep.subr.bf16.mxu0 %v1755_v0  ;;  %1464 = vmatprep.subr.bf16.mxu1 %v1755_v0 }
  0x94   : > { %1448 = vmatpush3.bf16.msra.mxu0 %v1447_v5  ;;  %1466 = vmatpush3.bf16.msra.mxu1 %v1991_v45 }
  0x95   : > { %1449 = vmatprep.subr.bf16.mxu0 %v1755_v0  ;;  %1467 = vmatprep.subr.bf16.mxu1 %v1755_v0 }
  0x98   : > { %1451 = vmatpush3.bf16.msra.mxu0 %v1450_v6  ;;  %1469 = vmatpush3.bf16.msra.mxu1 %v2006_v61 }
  0x99   : > { %1452 = vmatprep.subr.bf16.mxu0 %v1755_v0  ;;  %1470 = vmatprep.subr.bf16.mxu1 %v1755_v0 }
  0x9c   : > { %1454 = vmatpush3.bf16.msra.mxu0 %v1453_v7  ;;  %1472 = vmatpush3.bf16.msra.mxu1 %v2040_v38 }
  0x9d   : > { %1473 = vmatprep.subr.bf16.mxu1 %v1755_v0  ;;  %1479 = vmatprep.subr.bf16.mxu0 %v1755_v0 }
  0x9f   : > { %1276 = vmatmul.mubr.f32.vlgmr.msra.gmra.mrb[2].mxu0 %v2061_v56 }
  0xa0   : > { %1475 = vmatpush3.bf16.msra.mxu1 %v2063_v59  ;;  %1481 = vmatpush3.bf16.msra.mxu0 %v1480_v10 }
  0xa1   : > { %1476 = vmatprep.subr.bf16.mxu1 %v1755_v0  ;;  %1482 = vmatprep.subr.bf16.mxu0 %v1755_v0 }
  0xa2   : > { %1345 = vmatprep.mubr.msk.f32.mxu0 %vm1756_vm0, %v1757_v1 }
  0xa4   : > { %1478 = vmatpush3.bf16.msra.mxu1 %v2077_v8  ;;  %1484 = vmatpush3.bf16.msra.mxu0 %v1483_v12 }
  0xa5   : > { %1485 = vmatprep.subr.bf16.mxu0 %v1755_v0  ;;  %1503 = vmatprep.subr.bf16.mxu1 %v1755_v0 }
  0xa7   : > { %1311 = vmatmul.mubr.f32.vlgmr.msra.gmra.mrb[2].mxu1 %v357_v2 }
  0xa8   : > { %1487 = vmatpush3.bf16.msra.mxu0 %v1486_v16  ;;  %1505 = vmatpush3.bf16.msra.mxu1 %v1950_v15  ;;  %v1492_v15 = vpack.c.bf16 %v431_v14, %v424_v11 }
  0xa9   : > { %1488 = vmatprep.subr.bf16.mxu0 %v1755_v0  ;;  %1506 = vmatprep.subr.bf16.mxu1 %v1755_v0 }
  0xaa   : > { %1380 = vmatprep.mubr.msk.f32.mxu1 %vm1756_vm0, %v1757_v1  ;;  %v1495_v1 = vpack.c.bf16 %v445_v41, %v438_v37 }
  0xac   : > { %1490 = vmatpush3.bf16.msra.mxu0 %v1489_v17  ;;  %1508 = vmatpush3.bf16.msra.mxu1 %v1958_v21  ;;  %v1501_v21 = vpack.c.bf16 %v473_v63, %v466_v3 }
  0xad   : > { %1491 = vmatprep.subr.bf16.mxu0 %v1755_v0  ;;  %1509 = vmatprep.subr.bf16.mxu1 %v1755_v0 }
  0xb0   : > { %1493 = vmatpush3.bf16.msra.mxu0 %v1492_v15  ;;  %1511 = vmatpush3.bf16.msra.mxu1 %v1989_v42 }
  0xb1   : > { %1494 = vmatprep.subr.bf16.mxu0 %v1755_v0  ;;  %1512 = vmatprep.subr.bf16.mxu1 %v1755_v0 }
  0xb4   : > { %1496 = vmatpush3.bf16.msra.mxu0 %v1495_v1  ;;  %1514 = vmatpush3.bf16.msra.mxu1 %v1991_v45 }
  0xb5   : > { %1497 = vmatprep.subr.bf16.mxu0 %v1755_v0  ;;  %1515 = vmatprep.subr.bf16.mxu1 %v1755_v0 }
  0xb8   : > { %1499 = vmatpush3.bf16.msra.mxu0 %v1498_v18  ;;  %1517 = vmatpush3.bf16.msra.mxu1 %v2006_v61 }
  0xb9   : > { %1500 = vmatprep.subr.bf16.mxu0 %v1755_v0  ;;  %1518 = vmatprep.subr.bf16.mxu1 %v1755_v0 }
  0xbc   : > { %1502 = vmatpush3.bf16.msra.mxu0 %v1501_v21  ;;  %1520 = vmatpush3.bf16.msra.mxu1 %v2040_v38 }
  0xbd   : > { %1521 = vmatprep.subr.bf16.mxu1 %v1755_v0 }
  0xbf   : > { %1346 = vmatmul.mubr.f32.vlgmr.msra.gmra.mrb[4].mxu0 %v2048_v47 }
  0xc0   : > { %1523 = vmatpush3.bf16.msra.mxu1 %v2063_v59 }
  0xc1   : > { %1524 = vmatprep.subr.bf16.mxu1 %v1755_v0 }
  0xc4   : > { %1526 = vmatpush3.bf16.msra.mxu1 %v2077_v8 }
  0xc7   : > { %1381 = vmatmul.mubr.f32.vlgmr.msra.gmra.mrb[4].mxu1 %v2048_v47 }
 0x152   : > { %v361_v22 = vpop.f32.mrb[0].mxu0 }
 0x153   : > { %v1207_v23 = vpop.f32.mrb[1].mxu0 }
 0x15a   : > { %v512_v24 = vpop.f32.mrb[0].mxu1 }
 0x15b   : > { %v513_v25 = vadd.f32 %v512_v24, %v361_v22  ;;  %v1242_v29 = vpop.f32.mrb[1].mxu1 }
 0x172   : > { %v616_v30 = vpop.f32.mrb[2].mxu0 }
 0x173   : > { %v617_v32 = vadd.f32 %v616_v30, %v513_v25  ;;  %v1277_v35 = vpop.f32.mrb[3].mxu0 }
 0x17a   : > { %v705_v36 = vpop.f32.mrb[2].mxu1 }
 0x17b   : > { %v706_v42 = vadd.f32 %v705_v36, %v617_v32  ;;  %v1312_v45 = vpop.f32.mrb[3].mxu1 }
 0x192   : > { %v824_v48 = vpop.f32.mrb[4].mxu0 }
 0x193   : > { %v825_v0 = vadd.f32 %v824_v48, %v706_v42  ;;  %v1347_v49 = vpop.f32.mrb[5].mxu0 }
 0x19a   : > { %v911_v52 = vpop.f32.mrb[4].mxu1 }
 0x19b   : > { %v912_v55 = vadd.f32 %v911_v52, %v825_v0  ;;  %v1382_v57 = vpop.f32.mrb[5].mxu1 }
 0x19d   : > { %v928_v61 = vadd.f32 %v1066_v58, %v912_v55 }
 0x19f   : > { %929 = vst [vmem:[%s246_s9] sm:$0xff] %v928_v61 }
 0x1a0   : > { %1676 = shalt.err (!%p1673_p5)
}
 0x1a1   : > { %s1677_s21 = scalar_lea.hbm %s2213_s29, 128  ;;  %s1681_s27 = scalar_lea.hbm %s2265_s3, 256 }
 0x1a2   : > { %p1678_p9 = scmp.ne.s32.totalorder %s2213_s29, %s1677_s21  ;;  %p1682_p7 = scmp.lt.u32.totalorder %s2213_s29, %s2265_s3 }
 0x1a3   : > { %p1683_p3 = scmp.lt.u32.totalorder %s1681_s27, %s1677_s21  ;;  %p1685_p4 = scmp.lt.u32.totalorder %s1677_s21, %s2213_s29 }
 0x1a4   : > { %p1679_p1 = pnand %p1678_p9, %p1875_p10 }
 0x1a5   : > { %p1684_p13 = por %p1683_p3, %p1682_p7 }
 0x1a6   : > { %p1680_p2 = pneg %p1679_p1 }
 0x1a7   : > { %p1686_p6 = por %p1685_p4, %p1684_p13 }
 0x1a9   : > { %p1687_p8 = pnand %p1686_p6, %p1680_p2 }
 0x1ab   : > { %1690 = shalt.err (!%p1687_p8)
}
 0x1ac   : > { %1533 = dma.vmem_to_hbm [thread:$0]  (%p1875_p10), %s2215_s10, 128, %s2213_s29, %s931_s6  }
 0x1ad PF: > { %s957_s22 = sand.u32 1, %s1729_s12   ;;  %p2283_p12 = scmp.ne.s32.totalorder %s2273_s23, 0 }
 0x1ae   : > { %p2284_p11 = scmp.ge.s32.totalorder %s1749_s17, 2  ;;  %s958_s24 = scalar_lea.sflag [#allocation4], %s957_s22 }
 0x1b0   : > { %p1544_p0 = pnand %p2284_p11, %p2283_p12 }
 0x1b2   : > { %1724 = dma.done.wait (!%p1544_p0), %s958_s24, 128  }
 0x1b3   : > { %1726 = vsyncadd (!%p1544_p0), %s958_s24, 4294967168  ;;  %s20_s17 = sadd.s32 1, %s1749_s17   ;;  %s2285_s12 = smov %s1733_s13 }
 0x1b4   : > { %p17_p5 = scmp.ge.s32.totalorder %s20_s17, 4   ;;  %s2286_s13 = smov %s1737_s14 }
 0x1b5   : > { %s2287_s14 = smov %s1884_s5  ;;  %s2288_s15 = smov %s1745_s16 }
 0x1b6   : > { %s2289_s16 = smov %s2291_s28  ;;  %19 = sbr.rel (!%p17_p5) target bundleno = 7 (0x7), region = 93 }
 0x1bd   :  { %963 = vsyncpa [#allocation3], 1 }
 0x1be   :  { %965 = vsyncpa [#allocation3 + $0x1], 1 }
 0x1bf   :  { %966 = vsyncpa [#allocation6], 1 }
 0x1c0   :  { %967 = vsyncpa [#allocation4], 1 }
 0x1c1   :  { %969 = vsyncpa [#allocation4 + $0x1], 1 }

</bundles_post_ra>
